<compile_context>
chip_gen: v5e
topology: v5e:2x2
jax: 0.10.0
libtpu: 0.0.40
codegen_flags: <defaults>
</compile_context>

<pallas_src>
import numpy as np
import jax
import jax.numpy as jnp
from jax.experimental import pallas as pl
from jax.experimental.pallas import tpu as pltpu


def _round_up(x, m):
    return ((x + m - 1) // m) * m


class STFV1Pallas:
    """Pallas re-implementation of STF_v1.forward semantics."""

    def __init__(self, point_cloud_range, voxel_size, sparse_shape, batch_size):
        self.point_cloud_range = [float(v) for v in point_cloud_range]
        self.voxel_size = [float(v) for v in voxel_size]
        self.sparse_shape = [int(v) for v in sparse_shape]
        self.batch_size = int(batch_size)

    # ---------------------------------------------------------------------
    # Kernel 1: ego-motion compensation, all frames fused into one launch.
    #   coor2pts -> pts @ rot.T + trans (per batch) -> pts2coor -> bounds mask
    # Inputs:
    #   params (F, 12) f32  SMEM : [sz, sy, sx, 1/sz, 1/sy, 1/sx, spz, spy, spx, 0,0,0]
    #   rots   (F, B*9) f32 SMEM
    #   trans  (F, B*3) f32 SMEM
    #   idx    (F, 4, N_pad) f32  (rows: batch, z, y, x; points on lanes)
    # Outputs:
    #   coor   (F, 4, N_pad) i32
    #   valid  (F, 1, N_pad) i32
    # ---------------------------------------------------------------------
    def _ego_all_frames(self, idx_stack, params, rots, trans, TN):
        F, _, n_pad = idx_stack.shape
        B = self.batch_size
        pcx, pcy, pcz = self.point_cloud_range[:3]

        def kernel(params_ref, rot_ref, tr_ref, idx_ref, coor_ref, valid_ref):
            f = pl.program_id(0)
            sz = params_ref[f, 0]
            sy = params_ref[f, 1]
            sx = params_ref[f, 2]
            isz = params_ref[f, 3]
            isy = params_ref[f, 4]
            isx = params_ref[f, 5]
            spz = params_ref[f, 6]
            spy = params_ref[f, 7]
            spx = params_ref[f, 8]

            idx = idx_ref[0, :, :]                       # (4, TN) lane-dense
            batch = idx[0:1, :]                          # (1, TN)
            # ---- coor2pts: voxel index -> metric xyz (pad = 0) ----
            z = idx[1:2, :] * sz + pcz
            y = idx[2:3, :] * sy + pcy
            x = idx[3:4, :] * sx + pcx
            # ---- ego motion: pts @ rot.T + trans, selected per batch id ----
            ox = jnp.zeros_like(x)
            oy = jnp.zeros_like(y)
            oz = jnp.zeros_like(z)
            for b in range(B):                           # static, small B
                m = batch == float(b)
                r = [rot_ref[f, b * 9 + j] for j in range(9)]
                t = [tr_ref[f, b * 3 + j] for j in range(3)]
                tx = x * r[0] + y * r[1] + z * r[2] + t[0]
                ty = x * r[3] + y * r[4] + z * r[5] + t[1]
                tz = x * r[6] + y * r[7] + z * r[8] + t[2]
                ox = jnp.where(m, tx, ox)
                oy = jnp.where(m, ty, oy)
                oz = jnp.where(m, tz, oz)
            # ---- pts2coor: metric xyz -> voxel index (round half-to-even, like torch) ----
            cz = jnp.round((oz - pcz) * isz)
            cy = jnp.round((oy - pcy) * isy)
            cx = jnp.round((ox - pcx) * isx)
            coor = jnp.concatenate([batch, cz, cy, cx], axis=0).astype(jnp.int32)  # (4, TN)
            coor_ref[0, :, :] = coor
            # ---- bounds mask. NOTE: uses strict '>' against the spatial extent, which
            #      treats index == dim size as valid — inherited from the reference.
            over = (cz > spz) | (cy > spy) | (cx > spx)
            under = (cz < 0.0) | (cy < 0.0) | (cx < 0.0)
            valid_ref[0, :, :] = jnp.logical_not(over | under).astype(jnp.int32)

        grid = (F, n_pad // TN)
        coor, valid = pl.pallas_call(
            kernel,
            grid=grid,
            in_specs=[
                pl.BlockSpec(memory_space=pltpu.MemorySpace.SMEM),   # params (F, 12)
                pl.BlockSpec(memory_space=pltpu.MemorySpace.SMEM),   # rots   (F, B*9)
                pl.BlockSpec(memory_space=pltpu.MemorySpace.SMEM),   # trans  (F, B*3)
                pl.BlockSpec((1, 4, TN), lambda f, i: (f, 0, i)),    # indices, lane-dense
            ],
            out_specs=(
                pl.BlockSpec((1, 4, TN), lambda f, i: (f, 0, i)),
                pl.BlockSpec((1, 1, TN), lambda f, i: (f, 0, i)),
            ),
            out_shape=(
                jax.ShapeDtypeStruct((F, 4, n_pad), jnp.int32),
                jax.ShapeDtypeStruct((F, 1, n_pad), jnp.int32),
            ),
            compiler_params=pltpu.CompilerParams(
                dimension_semantics=("parallel", "parallel")),
        )(params, rots, trans, idx_stack)
        return coor, valid

    # ---------------------------------------------------------------------
    # Kernel 2: split_empty mask  (features.sum(channels) == 0)
    # Features are transposed to (C, N_pad) so the reduction runs over sublanes
    # and the mask is emitted lane-dense as (1, TN) tiles.
    # ---------------------------------------------------------------------
    def _empty_mask(self, feats):
        N, C = feats.shape
        TN = min(1024, _round_up(N, 128))
        n_pad = _round_up(N, TN)
        ft = jnp.transpose(feats.astype(jnp.float32))            # (C, N)
        ft = jnp.pad(ft, ((0, 0), (0, n_pad - N)))                # (C, N_pad)

        def kernel(f_ref, m_ref):
            s = jnp.sum(f_ref[...], axis=0, keepdims=True)        # (1, TN)
            # NOTE: exact float equality, matching the reference semantics.
            m_ref[...] = (s == 0.0).astype(jnp.int32)

        out = pl.pallas_call(
            kernel,
            grid=(n_pad // TN,),
            in_specs=[pl.BlockSpec((C, TN), lambda i: (0, i))],
            out_specs=pl.BlockSpec((1, TN), lambda i: (0, i)),
            out_shape=jax.ShapeDtypeStruct((1, n_pad), jnp.int32),
            compiler_params=pltpu.CompilerParams(
                dimension_semantics=("parallel",)),
        )(ft)
        return out[0, :N]                                         # (N,) int32

    # ---------------------------------------------------------------------
    # Forward (mirrors STF_v1.forward control flow)
    # ---------------------------------------------------------------------
    def forward(self, img_feats_seq, voxel_feats_seq, img_metas_seq, imgs_seq, gt_bboxes_3d):
        B = self.batch_size
        L = len(voxel_feats_seq)
        F = L - 1
        vx, vy, vz = self.voxel_size
        pcx, pcy, pcz = self.point_cloud_range[:3]

        # ego_motion_compensation: NOTE the reference computes compensated indices / masks
        # and then returns the ORIGINAL sequence — reproduced here (compute on device,
        # keep originals downstream).
        new_indices, valid_masks = [], []
        if F > 0:
            Ns = [int(voxel_feats_seq[i][1].shape[0]) for i in range(1, L)]
            max_N = max(Ns)
            TN = min(1024, _round_up(max_N, 128))
            n_pad = _round_up(max_N, TN)

            params = np.zeros((F, 12), np.float32)
            rots = np.zeros((F, B * 9), np.float32)
            trs = np.zeros((F, B * 3), np.float32)
            idx_stack = []
            for k, fi in enumerate(range(1, L)):
                _, indices, spatial_shape = voxel_feats_seq[fi]
                ratio = float(self.sparse_shape[1]) / float(spatial_shape[1])
                params[k, :9] = [
                    vz * ratio, vy * ratio, vx * ratio,
                    1.0 / (ratio * vz), 1.0 / (ratio * vy), 1.0 / (ratio * vx),
                    float(spatial_shape[0]), float(spatial_shape[1]), float(spatial_shape[2]),
                ]
                for b in range(B):
                    rots[k, b * 9:(b + 1) * 9] = np.asarray(
                        img_metas_seq[fi][b]["ego_rot"], np.float32).reshape(9)
                    trs[k, b * 3:(b + 1) * 3] = np.asarray(
                        img_metas_seq[fi][b]["ego_trans"], np.float32).reshape(3)
                idx_t = jnp.transpose(indices.astype(jnp.float32))         # (4, N_f)
                idx_t = jnp.pad(idx_t, ((0, 0), (0, n_pad - idx_t.shape[1])))
                idx_stack.append(idx_t)
            idx_stack = jnp.stack(idx_stack)                                # (F, 4, N_pad)

            coor, valid = self._ego_all_frames(
                idx_stack, jnp.asarray(params), jnp.asarray(rots), jnp.asarray(trs), TN)
            for k in range(F):
                Nf = Ns[k]
                new_indices.append(jnp.transpose(coor[k, :, :Nf]))          # (Nf, 4) i32
                valid_masks.append(valid[k, 0, :Nf])                        # (Nf,)  i32

        # TODO(synk): QueryInit (sparse submanifold conv + box-of-points loss) is an external
        # module with no definition available; pts_query is taken as the first (uncompensated)
        # frame of the sequence, matching the tensor it operates on.
        pts_query_feats, pts_query_indices, _ = voxel_feats_seq[0]
        loss_box_of_pts = jnp.zeros((), jnp.float32)

        # split_empty: mask computed in Pallas; stable empty/non-empty partition done on
        # device, with a SINGLE batched device_get for the ragged host-side split.
        N0 = pts_query_feats.shape[0]
        mask_i32 = self._empty_mask(pts_query_feats)                        # (N0,) i32
        key = (1 - mask_i32) * jnp.int32(N0 + 1) + jnp.arange(N0, dtype=jnp.int32)
        order = jnp.argsort(key)                                            # empties first, stable
        sorted_feats = jnp.take(pts_query_feats, order, axis=0)
        sorted_idx = jnp.take(pts_query_indices, order, axis=0)
        num_empty = jnp.sum(mask_i32)
        num_empty_h, feats_h, idx_h = jax.device_get((num_empty, sorted_feats, sorted_idx))
        ke = int(num_empty_h)
        empty_pts_query = (feats_h[:ke], idx_h[:ke])
        non_empty_pts_query = (feats_h[ke:], idx_h[ke:])

        # TODO(synk): STFTR transformer (self.stf) is an external registered module with no
        # definition available; its forward cannot be reproduced here.
        fuse_out = dict(
            compensated_indices=new_indices,
            compensated_valid=valid_masks,
            empty_pts_query=empty_pts_query,
            non_empty_pts_query=non_empty_pts_query,
            loss_box_of_pts=loss_box_of_pts,
        )
        return fuse_out


if __name__ == "__main__":
    key = jax.random.PRNGKey(0)
    B, L, N, C = 2, 3, 64, 16
    sparse_shape = [16, 128, 128]        # [z, y, x] at full resolution
    spatial_shape = [8, 64, 64]          # frame resolution -> ratio = 2
    voxel_size = [0.05, 0.05, 0.1]       # [vx, vy, vz]
    point_cloud_range = [0.0, -3.2, -0.8, 6.4, 3.2, 0.8]

    model = STFV1Pallas(point_cloud_range, voxel_size, sparse_shape, batch_size=B)

    # deterministic synthetic sparse voxel sequence
    voxel_feats_seq = []
    for s in range(L):
        key, kf, kz, ky, kx = jax.random.split(key, 5)
        feats = jax.random.normal(kf, (N, C), jnp.float32)
        if s == 0:
            # zero some rows so split_empty has both branches
            feats = feats.at[: N // 4].set(0.0)
        bcol = jnp.repeat(jnp.arange(B, dtype=jnp.int32), N // B)
        zcol = jax.random.randint(kz, (N,), 0, spatial_shape[0], jnp.int32)
        ycol = jax.random.randint(ky, (N,), 0, spatial_shape[1], jnp.int32)
        xcol = jax.random.randint(kx, (N,), 0, spatial_shape[2], jnp.int32)
        indices = jnp.stack([bcol, zcol, ycol, xcol], axis=1)
        voxel_feats_seq.append((feats, indices, spatial_shape))

    # deterministic ego rotations (about z) + translations per frame/batch
    img_metas_seq = []
    for s in range(L):
        metas = []
        for b in range(B):
            ang = 0.05 * (s + 1) * (b + 1)
            c, si = np.cos(ang), np.sin(ang)
            rot = np.array([[c, -si, 0.0], [si, c, 0.0], [0.0, 0.0, 1.0]], np.float32)
            tr = np.array([0.1 * (s + 1), -0.05 * (b + 1), 0.01], np.float32)
            metas.append({"ego_rot": rot, "ego_trans": tr})
        img_metas_seq.append(metas)

    img_feats_seq = [jnp.zeros((B, 8, 8, 8), jnp.float32) for _ in range(L)]  # unused placeholders
    imgs_seq = [jnp.zeros((B, 3, 16, 16), jnp.float32) for _ in range(L)]
    gt_bboxes_3d = None

    out = model.forward(img_feats_seq, voxel_feats_seq, img_metas_seq, imgs_seq, gt_bboxes_3d)
    for c_ in out["compensated_indices"]:
        jax.block_until_ready(c_)
    for v_ in out["compensated_valid"]:
        jax.block_until_ready(v_)
    jax.block_until_ready(out["loss_box_of_pts"])
    print("KERNEL_OK")
</pallas_src>

<mosaic_0001>
module attributes {stable_mosaic.version = 11 : i64} {
  func.func @kernel(%arg0: i32, %arg1: i32, %arg2: memref<2x12xf32, #tpu.memory_space<smem>>, %arg3: memref<2x18xf32, #tpu.memory_space<smem>>, %arg4: memref<2x6xf32, #tpu.memory_space<smem>>, %arg5: memref<1x4x128xf32, #tpu.memory_space<vmem>>, %arg6: memref<1x4x128xi32, #tpu.memory_space<vmem>>, %arg7: memref<1x1x128xi32, #tpu.memory_space<vmem>>) attributes {dimension_semantics = [#tpu.dimension_semantics<parallel>, #tpu.dimension_semantics<parallel>], iteration_bounds = array<i64: 2, 1>, scalar_prefetch = 0 : i64, scratch_operands = 0 : i64, tpu.core_type = #tpu.core_type<tc>, window_params = [{transform_indices = @transform_0, window_bounds = array<i64: 2, 12>}, {transform_indices = @transform_1, window_bounds = array<i64: 2, 18>}, {transform_indices = @transform_2, window_bounds = array<i64: 2, 6>}, {transform_indices = @transform_3, window_bounds = array<i64: 1, 4, 128>}, {transform_indices = @transform_4, window_bounds = array<i64: 1, 4, 128>}, {transform_indices = @transform_5, window_bounds = array<i64: 1, 1, 128>}]} {
    %0 = arith.index_cast %arg0 : i32 to index
    %c0 = arith.constant 0 : index
    %1 = memref.load %arg2[%0, %c0] : memref<2x12xf32, #tpu.memory_space<smem>>
    %2 = arith.index_cast %arg0 : i32 to index
    %c1 = arith.constant 1 : index
    %3 = memref.load %arg2[%2, %c1] : memref<2x12xf32, #tpu.memory_space<smem>>
    %4 = arith.index_cast %arg0 : i32 to index
    %c2 = arith.constant 2 : index
    %5 = memref.load %arg2[%4, %c2] : memref<2x12xf32, #tpu.memory_space<smem>>
    %6 = arith.index_cast %arg0 : i32 to index
    %c3 = arith.constant 3 : index
    %7 = memref.load %arg2[%6, %c3] : memref<2x12xf32, #tpu.memory_space<smem>>
    %8 = arith.index_cast %arg0 : i32 to index
    %c4 = arith.constant 4 : index
    %9 = memref.load %arg2[%8, %c4] : memref<2x12xf32, #tpu.memory_space<smem>>
    %10 = arith.index_cast %arg0 : i32 to index
    %c5 = arith.constant 5 : index
    %11 = memref.load %arg2[%10, %c5] : memref<2x12xf32, #tpu.memory_space<smem>>
    %12 = arith.index_cast %arg0 : i32 to index
    %c6 = arith.constant 6 : index
    %13 = memref.load %arg2[%12, %c6] : memref<2x12xf32, #tpu.memory_space<smem>>
    %14 = arith.index_cast %arg0 : i32 to index
    %c7 = arith.constant 7 : index
    %15 = memref.load %arg2[%14, %c7] : memref<2x12xf32, #tpu.memory_space<smem>>
    %16 = arith.index_cast %arg0 : i32 to index
    %c8 = arith.constant 8 : index
    %17 = memref.load %arg2[%16, %c8] : memref<2x12xf32, #tpu.memory_space<smem>>
    %c0_0 = arith.constant 0 : index
    %c0_1 = arith.constant 0 : index
    %c0_2 = arith.constant 0 : index
    %18 = vector.load %arg5[%c0_0, %c0_1, %c0_2] : memref<1x4x128xf32, #tpu.memory_space<vmem>>, vector<1x4x128xf32>
    %19 = vector.shape_cast %18 : vector<1x4x128xf32> to vector<4x128xf32>
    %20 = vector.extract_strided_slice %19 {offsets = [0, 0], sizes = [1, 128], strides = [1, 1]} : vector<4x128xf32> to vector<1x128xf32>
    %21 = vector.extract_strided_slice %19 {offsets = [1, 0], sizes = [1, 128], strides = [1, 1]} : vector<4x128xf32> to vector<1x128xf32>
    %22 = vector.broadcast %1 : f32 to vector<1x128xf32>
    %23 = arith.mulf %21, %22 : vector<1x128xf32>
    %cst = arith.constant -8.000000e-01 : f32
    %24 = vector.broadcast %cst : f32 to vector<1x128xf32>
    %25 = arith.addf %23, %24 : vector<1x128xf32>
    %26 = vector.extract_strided_slice %19 {offsets = [2, 0], sizes = [1, 128], strides = [1, 1]} : vector<4x128xf32> to vector<1x128xf32>
    %27 = vector.broadcast %3 : f32 to vector<1x128xf32>
    %28 = arith.mulf %26, %27 : vector<1x128xf32>
    %cst_3 = arith.constant -3.200000e+00 : f32
    %29 = vector.broadcast %cst_3 : f32 to vector<1x128xf32>
    %30 = arith.addf %28, %29 : vector<1x128xf32>
    %31 = vector.extract_strided_slice %19 {offsets = [3, 0], sizes = [1, 128], strides = [1, 1]} : vector<4x128xf32> to vector<1x128xf32>
    %32 = vector.broadcast %5 : f32 to vector<1x128xf32>
    %33 = arith.mulf %31, %32 : vector<1x128xf32>
    %cst_4 = arith.constant 0.000000e+00 : f32
    %34 = vector.broadcast %cst_4 : f32 to vector<1x128xf32>
    %35 = arith.addf %33, %34 : vector<1x128xf32>
    %cst_5 = arith.constant 0.000000e+00 : f32
    %36 = vector.broadcast %cst_5 : f32 to vector<1x128xf32>
    %cst_6 = arith.constant 0.000000e+00 : f32
    %37 = vector.broadcast %cst_6 : f32 to vector<1x128xf32>
    %cst_7 = arith.constant 0.000000e+00 : f32
    %38 = vector.broadcast %cst_7 : f32 to vector<1x128xf32>
    %cst_8 = arith.constant 0.000000e+00 : f32
    %39 = vector.broadcast %cst_8 : f32 to vector<1x128xf32>
    %40 = arith.cmpf oeq, %20, %39 : vector<1x128xf32>
    %41 = arith.index_cast %arg0 : i32 to index
    %c0_9 = arith.constant 0 : index
    %42 = memref.load %arg3[%41, %c0_9] : memref<2x18xf32, #tpu.memory_space<smem>>
    %43 = arith.index_cast %arg0 : i32 to index
    %c1_10 = arith.constant 1 : index
    %44 = memref.load %arg3[%43, %c1_10] : memref<2x18xf32, #tpu.memory_space<smem>>
    %45 = arith.index_cast %arg0 : i32 to index
    %c2_11 = arith.constant 2 : index
    %46 = memref.load %arg3[%45, %c2_11] : memref<2x18xf32, #tpu.memory_space<smem>>
    %47 = arith.index_cast %arg0 : i32 to index
    %c3_12 = arith.constant 3 : index
    %48 = memref.load %arg3[%47, %c3_12] : memref<2x18xf32, #tpu.memory_space<smem>>
    %49 = arith.index_cast %arg0 : i32 to index
    %c4_13 = arith.constant 4 : index
    %50 = memref.load %arg3[%49, %c4_13] : memref<2x18xf32, #tpu.memory_space<smem>>
    %51 = arith.index_cast %arg0 : i32 to index
    %c5_14 = arith.constant 5 : index
    %52 = memref.load %arg3[%51, %c5_14] : memref<2x18xf32, #tpu.memory_space<smem>>
    %53 = arith.index_cast %arg0 : i32 to index
    %c6_15 = arith.constant 6 : index
    %54 = memref.load %arg3[%53, %c6_15] : memref<2x18xf32, #tpu.memory_space<smem>>
    %55 = arith.index_cast %arg0 : i32 to index
    %c7_16 = arith.constant 7 : index
    %56 = memref.load %arg3[%55, %c7_16] : memref<2x18xf32, #tpu.memory_space<smem>>
    %57 = arith.index_cast %arg0 : i32 to index
    %c8_17 = arith.constant 8 : index
    %58 = memref.load %arg3[%57, %c8_17] : memref<2x18xf32, #tpu.memory_space<smem>>
    %59 = arith.index_cast %arg0 : i32 to index
    %c0_18 = arith.constant 0 : index
    %60 = memref.load %arg4[%59, %c0_18] : memref<2x6xf32, #tpu.memory_space<smem>>
    %61 = arith.index_cast %arg0 : i32 to index
    %c1_19 = arith.constant 1 : index
    %62 = memref.load %arg4[%61, %c1_19] : memref<2x6xf32, #tpu.memory_space<smem>>
    %63 = arith.index_cast %arg0 : i32 to index
    %c2_20 = arith.constant 2 : index
    %64 = memref.load %arg4[%63, %c2_20] : memref<2x6xf32, #tpu.memory_space<smem>>
    %65 = vector.broadcast %42 : f32 to vector<1x128xf32>
    %66 = arith.mulf %35, %65 : vector<1x128xf32>
    %67 = vector.broadcast %44 : f32 to vector<1x128xf32>
    %68 = arith.mulf %30, %67 : vector<1x128xf32>
    %69 = arith.addf %66, %68 : vector<1x128xf32>
    %70 = vector.broadcast %46 : f32 to vector<1x128xf32>
    %71 = arith.mulf %25, %70 : vector<1x128xf32>
    %72 = arith.addf %69, %71 : vector<1x128xf32>
    %73 = vector.broadcast %60 : f32 to vector<1x128xf32>
    %74 = arith.addf %72, %73 : vector<1x128xf32>
    %75 = vector.broadcast %48 : f32 to vector<1x128xf32>
    %76 = arith.mulf %35, %75 : vector<1x128xf32>
    %77 = vector.broadcast %50 : f32 to vector<1x128xf32>
    %78 = arith.mulf %30, %77 : vector<1x128xf32>
    %79 = arith.addf %76, %78 : vector<1x128xf32>
    %80 = vector.broadcast %52 : f32 to vector<1x128xf32>
    %81 = arith.mulf %25, %80 : vector<1x128xf32>
    %82 = arith.addf %79, %81 : vector<1x128xf32>
    %83 = vector.broadcast %62 : f32 to vector<1x128xf32>
    %84 = arith.addf %82, %83 : vector<1x128xf32>
    %85 = vector.broadcast %54 : f32 to vector<1x128xf32>
    %86 = arith.mulf %35, %85 : vector<1x128xf32>
    %87 = vector.broadcast %56 : f32 to vector<1x128xf32>
    %88 = arith.mulf %30, %87 : vector<1x128xf32>
    %89 = arith.addf %86, %88 : vector<1x128xf32>
    %90 = vector.broadcast %58 : f32 to vector<1x128xf32>
    %91 = arith.mulf %25, %90 : vector<1x128xf32>
    %92 = arith.addf %89, %91 : vector<1x128xf32>
    %93 = vector.broadcast %64 : f32 to vector<1x128xf32>
    %94 = arith.addf %92, %93 : vector<1x128xf32>
    %95 = arith.select %40, %74, %36 : vector<1x128xi1>, vector<1x128xf32>
    %96 = arith.select %40, %84, %37 : vector<1x128xi1>, vector<1x128xf32>
    %97 = arith.select %40, %94, %38 : vector<1x128xi1>, vector<1x128xf32>
    %cst_21 = arith.constant 1.000000e+00 : f32
    %98 = vector.broadcast %cst_21 : f32 to vector<1x128xf32>
    %99 = arith.cmpf oeq, %20, %98 : vector<1x128xf32>
    %100 = arith.index_cast %arg0 : i32 to index
    %c9 = arith.constant 9 : index
    %101 = memref.load %arg3[%100, %c9] : memref<2x18xf32, #tpu.memory_space<smem>>
    %102 = arith.index_cast %arg0 : i32 to index
    %c10 = arith.constant 10 : index
    %103 = memref.load %arg3[%102, %c10] : memref<2x18xf32, #tpu.memory_space<smem>>
    %104 = arith.index_cast %arg0 : i32 to index
    %c11 = arith.constant 11 : index
    %105 = memref.load %arg3[%104, %c11] : memref<2x18xf32, #tpu.memory_space<smem>>
    %106 = arith.index_cast %arg0 : i32 to index
    %c12 = arith.constant 12 : index
    %107 = memref.load %arg3[%106, %c12] : memref<2x18xf32, #tpu.memory_space<smem>>
    %108 = arith.index_cast %arg0 : i32 to index
    %c13 = arith.constant 13 : index
    %109 = memref.load %arg3[%108, %c13] : memref<2x18xf32, #tpu.memory_space<smem>>
    %110 = arith.index_cast %arg0 : i32 to index
    %c14 = arith.constant 14 : index
    %111 = memref.load %arg3[%110, %c14] : memref<2x18xf32, #tpu.memory_space<smem>>
    %112 = arith.index_cast %arg0 : i32 to index
    %c15 = arith.constant 15 : index
    %113 = memref.load %arg3[%112, %c15] : memref<2x18xf32, #tpu.memory_space<smem>>
    %114 = arith.index_cast %arg0 : i32 to index
    %c16 = arith.constant 16 : index
    %115 = memref.load %arg3[%114, %c16] : memref<2x18xf32, #tpu.memory_space<smem>>
    %116 = arith.index_cast %arg0 : i32 to index
    %c17 = arith.constant 17 : index
    %117 = memref.load %arg3[%116, %c17] : memref<2x18xf32, #tpu.memory_space<smem>>
    %118 = arith.index_cast %arg0 : i32 to index
    %c3_22 = arith.constant 3 : index
    %119 = memref.load %arg4[%118, %c3_22] : memref<2x6xf32, #tpu.memory_space<smem>>
    %120 = arith.index_cast %arg0 : i32 to index
    %c4_23 = arith.constant 4 : index
    %121 = memref.load %arg4[%120, %c4_23] : memref<2x6xf32, #tpu.memory_space<smem>>
    %122 = arith.index_cast %arg0 : i32 to index
    %c5_24 = arith.constant 5 : index
    %123 = memref.load %arg4[%122, %c5_24] : memref<2x6xf32, #tpu.memory_space<smem>>
    %124 = vector.broadcast %101 : f32 to vector<1x128xf32>
    %125 = arith.mulf %35, %124 : vector<1x128xf32>
    %126 = vector.broadcast %103 : f32 to vector<1x128xf32>
    %127 = arith.mulf %30, %126 : vector<1x128xf32>
    %128 = arith.addf %125, %127 : vector<1x128xf32>
    %129 = vector.broadcast %105 : f32 to vector<1x128xf32>
    %130 = arith.mulf %25, %129 : vector<1x128xf32>
    %131 = arith.addf %128, %130 : vector<1x128xf32>
    %132 = vector.broadcast %119 : f32 to vector<1x128xf32>
    %133 = arith.addf %131, %132 : vector<1x128xf32>
    %134 = vector.broadcast %107 : f32 to vector<1x128xf32>
    %135 = arith.mulf %35, %134 : vector<1x128xf32>
    %136 = vector.broadcast %109 : f32 to vector<1x128xf32>
    %137 = arith.mulf %30, %136 : vector<1x128xf32>
    %138 = arith.addf %135, %137 : vector<1x128xf32>
    %139 = vector.broadcast %111 : f32 to vector<1x128xf32>
    %140 = arith.mulf %25, %139 : vector<1x128xf32>
    %141 = arith.addf %138, %140 : vector<1x128xf32>
    %142 = vector.broadcast %121 : f32 to vector<1x128xf32>
    %143 = arith.addf %141, %142 : vector<1x128xf32>
    %144 = vector.broadcast %113 : f32 to vector<1x128xf32>
    %145 = arith.mulf %35, %144 : vector<1x128xf32>
    %146 = vector.broadcast %115 : f32 to vector<1x128xf32>
    %147 = arith.mulf %30, %146 : vector<1x128xf32>
    %148 = arith.addf %145, %147 : vector<1x128xf32>
    %149 = vector.broadcast %117 : f32 to vector<1x128xf32>
    %150 = arith.mulf %25, %149 : vector<1x128xf32>
    %151 = arith.addf %148, %150 : vector<1x128xf32>
    %152 = vector.broadcast %123 : f32 to vector<1x128xf32>
    %153 = arith.addf %151, %152 : vector<1x128xf32>
    %154 = arith.select %99, %133, %95 : vector<1x128xi1>, vector<1x128xf32>
    %155 = arith.select %99, %143, %96 : vector<1x128xi1>, vector<1x128xf32>
    %156 = arith.select %99, %153, %97 : vector<1x128xi1>, vector<1x128xf32>
    %cst_25 = arith.constant -8.000000e-01 : f32
    %157 = vector.broadcast %cst_25 : f32 to vector<1x128xf32>
    %158 = arith.subf %156, %157 : vector<1x128xf32>
    %159 = vector.broadcast %7 : f32 to vector<1x128xf32>
    %160 = arith.mulf %158, %159 : vector<1x128xf32>
    %161 = math.roundeven %160 : vector<1x128xf32>
    %cst_26 = arith.constant -3.200000e+00 : f32
    %162 = vector.broadcast %cst_26 : f32 to vector<1x128xf32>
    %163 = arith.subf %155, %162 : vector<1x128xf32>
    %164 = vector.broadcast %9 : f32 to vector<1x128xf32>
    %165 = arith.mulf %163, %164 : vector<1x128xf32>
    %166 = math.roundeven %165 : vector<1x128xf32>
    %cst_27 = arith.constant 0.000000e+00 : f32
    %167 = vector.broadcast %cst_27 : f32 to vector<1x128xf32>
    %168 = arith.subf %154, %167 : vector<1x128xf32>
    %169 = vector.broadcast %11 : f32 to vector<1x128xf32>
    %170 = arith.mulf %168, %169 : vector<1x128xf32>
    %171 = math.roundeven %170 : vector<1x128xf32>
    %172 = tpu.concatenate %20, %161, %166, %171 in 0 : vector<1x128xf32>, vector<1x128xf32>, vector<1x128xf32>, vector<1x128xf32> -> vector<4x128xf32>
    %173 = arith.fptosi %172 : vector<4x128xf32> to vector<4x128xi32>
    %c0_28 = arith.constant 0 : index
    %c0_29 = arith.constant 0 : index
    %c0_30 = arith.constant 0 : index
    %174 = vector.load %arg6[%c0_28, %c0_29, %c0_30] : memref<1x4x128xi32, #tpu.memory_space<vmem>>, vector<1x4x128xi32>
    %175 = vector.shape_cast %174 : vector<1x4x128xi32> to vector<4x128xi32>
    %176 = vector.shape_cast %173 : vector<4x128xi32> to vector<1x4x128xi32>
    tpu.vector_store %arg6[%c0_28, %c0_29, %c0_30], %176 {strides = array<i32>} : memref<1x4x128xi32, #tpu.memory_space<vmem>>, vector<1x4x128xi32>,
    %177 = vector.broadcast %13 : f32 to vector<1x128xf32>
    %178 = arith.cmpf ogt, %161, %177 : vector<1x128xf32>
    %179 = vector.broadcast %15 : f32 to vector<1x128xf32>
    %180 = arith.cmpf ogt, %166, %179 : vector<1x128xf32>
    %181 = arith.ori %178, %180 : vector<1x128xi1>
    %182 = vector.broadcast %17 : f32 to vector<1x128xf32>
    %183 = arith.cmpf ogt, %171, %182 : vector<1x128xf32>
    %184 = arith.ori %181, %183 : vector<1x128xi1>
    %cst_31 = arith.constant 0.000000e+00 : f32
    %185 = vector.broadcast %cst_31 : f32 to vector<1x128xf32>
    %186 = arith.cmpf olt, %161, %185 : vector<1x128xf32>
    %cst_32 = arith.constant 0.000000e+00 : f32
    %187 = vector.broadcast %cst_32 : f32 to vector<1x128xf32>
    %188 = arith.cmpf olt, %166, %187 : vector<1x128xf32>
    %189 = arith.ori %186, %188 : vector<1x128xi1>
    %cst_33 = arith.constant 0.000000e+00 : f32
    %190 = vector.broadcast %cst_33 : f32 to vector<1x128xf32>
    %191 = arith.cmpf olt, %171, %190 : vector<1x128xf32>
    %192 = arith.ori %189, %191 : vector<1x128xi1>
    %193 = arith.ori %184, %192 : vector<1x128xi1>
    %cst_34 = arith.constant dense<true> : vector<1x128xi1>
    %194 = arith.xori %193, %cst_34 : vector<1x128xi1>
    %195 = arith.extui %194 : vector<1x128xi1> to vector<1x128xi32>
    %c0_35 = arith.constant 0 : index
    %c0_36 = arith.constant 0 : index
    %c0_37 = arith.constant 0 : index
    %196 = vector.load %arg7[%c0_35, %c0_36, %c0_37] : memref<1x1x128xi32, #tpu.memory_space<vmem>>, vector<1x1x128xi32>
    %197 = vector.shape_cast %196 : vector<1x1x128xi32> to vector<1x128xi32>
    %198 = vector.shape_cast %195 : vector<1x128xi32> to vector<1x1x128xi32>
    tpu.vector_store %arg7[%c0_35, %c0_36, %c0_37], %198 {strides = array<i32>} : memref<1x1x128xi32, #tpu.memory_space<vmem>>, vector<1x1x128xi32>,
    return
  }
  func.func @transform_0(%arg0: i32, %arg1: i32) -> (i32, i32) {
    %c0_i32 = arith.constant 0 : i32
    %c0_i32_0 = arith.constant 0 : i32
    %c0_i32_1 = arith.constant 0 : i32
    return %c0_i32, %c0_i32_0 : i32, i32
  }
  func.func @transform_1(%arg0: i32, %arg1: i32) -> (i32, i32) {
    %c0_i32 = arith.constant 0 : i32
    %c0_i32_0 = arith.constant 0 : i32
    %c0_i32_1 = arith.constant 0 : i32
    return %c0_i32, %c0_i32_0 : i32, i32
  }
  func.func @transform_2(%arg0: i32, %arg1: i32) -> (i32, i32) {
    %c0_i32 = arith.constant 0 : i32
    %c0_i32_0 = arith.constant 0 : i32
    %c0_i32_1 = arith.constant 0 : i32
    return %c0_i32, %c0_i32_0 : i32, i32
  }
  func.func @transform_3(%arg0: i32, %arg1: i32) -> (i32, i32, i32) {
    %c0_i32 = arith.constant 0 : i32
    %c0_i32_0 = arith.constant 0 : i32
    return %arg0, %c0_i32, %arg1 : i32, i32, i32
  }
  func.func @transform_4(%arg0: i32, %arg1: i32) -> (i32, i32, i32) {
    %c0_i32 = arith.constant 0 : i32
    %c0_i32_0 = arith.constant 0 : i32
    return %arg0, %c0_i32, %arg1 : i32, i32, i32
  }
  func.func @transform_5(%arg0: i32, %arg1: i32) -> (i32, i32, i32) {
    %c0_i32 = arith.constant 0 : i32
    %c0_i32_0 = arith.constant 0 : i32
    return %arg0, %c0_i32, %arg1 : i32, i32, i32
  }
}

</mosaic_0001>

<bundles_post_ra>
// kernel: tpu_custom_call.1
= control target key start
LH: loop header
LB: loop body
LE: loop exit
PB: predicated region body
PF: predicated region fallthrough
CT: control target
= control target key end

     0   :  { %s1468_s0 = inlined_call_operand.hbm [shape: f32[2,12], index: 0, kind: input, shape index: {}]   ;;  %s1469_s1 = inlined_call_operand.hbm [shape: f32[2,18], index: 1, kind: input, shape index: {}]   ;;  %s1470_s2 = inlined_call_operand.hbm [shape: f32[2,6], index: 2, kind: input, shape index: {}]   ;;  %s1471_s3 = inlined_call_operand.hbm [shape: f32[2,4,128], index: 3, kind: input, shape index: {}]   ;;  %s1472_s4 = inlined_call_operand.hbm [shape: s32[2,4,128], index: 4, kind: output, shape index: {0}]   ;;  %s1473_s5 = inlined_call_operand.hbm [shape: s32[2,1,128], index: 5, kind: output, shape index: {1}]  }
   0x1   :  { %1481 = sst [smem:[#allocation22_spill]] %s1468_s0 }
   0x2   :  { %1482 = sst [smem:[#allocation23_spill]] %s1469_s1 }
   0x3   :  { %1483 = sst [smem:[#allocation24_spill]] %s1470_s2 }
   0x4   :  { %1484 = sst [smem:[#allocation25_spill]] %s1471_s3 }
   0x5   :  { %11 = vsyncpa [#allocation5], 0 }
   0x6   :  { %12 = vsyncpa [#allocation7], 0 }
   0x7   :  { %13 = vsyncpa [#allocation3], 0 }
   0x8   :  { %15 = vsyncpa [#allocation3 + $0x1], 0 }
   0x9   :  { %16 = vsyncpa [#allocation4], 0 }
   0xa   :  { %18 = vsyncpa [#allocation4 + $0x1], 0 }
   0xb   :  { %19 = vsyncpa [#allocation12], 0 }
   0xc   :  { %21 = vsyncpa [#allocation12 + $0x1], 0  ;;  %s1098_s18 = smov 0   ;;  %s1100_s19 = smov 0  }
   0xd   :  { %s1102_s20 = smov 0   ;;  %s1104_s21 = smov 0  }
   0xe   :  { %s1106_s22 = smov 0   ;;  %s1108_s23 = smov 0  }
   0xf LB: > { %1485 = sst [smem:[#allocation18_spill]] %s1049_s20  ;;  %s713_s24 = sadd.s32 4294967295, %s1061_s23   ;;  %s1061_s23 = sphi %s1108_s23, %s27_s23   ;;  %s1057_s22 = sphi %s1106_s22, %s1511_s22   ;;  %s1053_s21 = sphi %s1104_s21, %s1510_s21   ;;  %s1049_s20 = sphi %s1102_s20, %s1509_s20   ;;  %s1045_s19 = sphi %s1100_s19, %s1513_s19   ;;  %s1041_s18 = sphi %s1098_s18, %s1512_s18  }
  0x10   : > { %1486 = sst [smem:[#allocation19_spill]] %s1057_s22  ;;  %s714_s25 = sadd.s32 4294967294, %s1061_s23  }
  0x11   : > { %p124_p0 = scmp.ne.s32.totalorder %s1045_s19, %s1041_s18  ;;  %p1132_p1 = scmp.eq.s32.totalorder %s713_s24, 0 }
  0x12   : > { %p1136_p2 = scmp.eq.s32.totalorder %s713_s24, 1  ;;  %p156_p3 = scmp.eq.s32.totalorder %s714_s25, 1 }
  0x13   : > { %p1142_p4 = por %p1132_p1, %p124_p0  ;;  %p715_p5 = scmp.ge.s32.totalorder %s1061_s23, 1 }
  0x14   : > { %p1147_p6 = por %p156_p3, %p124_p0  ;;  %p191_p7 = scmp.lt.s32.totalorder %s1061_s23, 3 }
  0x15   : > { %s1491_s1 = sld [smem:[#allocation23_spill]]  ;;  %p719_p9 = scmp.ge.s32.totalorder %s1061_s23, 2 }
  0x16   : > { %p1155_p8 = pnand %p715_p5, %p191_p7  ;;  %s1493_s0 = sld [smem:[#allocation22_spill]] }
  0x17   : > { %s1494_s2 = sld [smem:[#allocation24_spill]]  ;;  %s1063_s15 = smov [#allocation6]  }
  0x18   : > { %p782_p10 = pneg %p1155_p8  ;;  %s1064_s16 = smov [#allocation2]  }
  0x19   : > { %s1065_s17 = smov [#allocation8]   ;;  %s111_s24 = sadd.s32 1, %s1049_s20 }
  0x1a   : > { %p783_p11 = pnand %p782_p10, %p1132_p1  ;;  %s39_s25 = sadd.s32 1, %s1057_s22 }
  0x1b   : > { %s213_s7 = sshll.u32 %s1491_s1, 4  ;;  %p118_p12 = scmp.ne.s32.totalorder %s1049_s20, %s1045_s19  ;;  %s214_s7 = int_to_ptr.hbm [resolvable:$true] %s213_s7 }
  0x1c   : > { %s203_s11 = sshll.u32 %s1493_s0, 4  ;;  %p41_p13 = scmp.ge.s32.totalorder %s39_s25, 2  ;;  %s204_s11 = int_to_ptr.hbm [resolvable:$true] %s203_s11 }
  0x1d   : > { %s223_s14 = sshll.u32 %s1494_s2, 4  ;;  %p119_p0 = scmp.eq.s32.totalorder %s1061_s23, 0  ;;  %s224_s14 = int_to_ptr.hbm [resolvable:$true] %s223_s14 }
  0x1e   : > { %788 = dma.hbm_to_smem (!%p783_p11), %s214_s7, 32, %s1063_s15, [#allocation7]  }
  0x1f   : > { %785 = dma.hbm_to_smem (!%p783_p11), %s204_s11, 32, %s1064_s16, [#allocation5]  }
  0x20   : > { %791 = dma.hbm_to_smem (!%p783_p11), %s224_s14, 32, %s1065_s17, [#allocation7]  }
  0x21   : > { %p1177_p3 = por %p1136_p2, %p118_p12  ;;  %p806_p5 = scmp.lt.s32.totalorder %s1061_s23, 2 }
  0x22   : > { %s1515_s25 = smov (%p41_p13, %s39_s25), 0  ;;  %p1184_p7 = por %p119_p0, %p118_p12 }
  0x23   : > { %1496 = sst [smem:[#allocation20_spill]] %s1515_s25  ;;  %s234_s7 = sand.u32 1, %s1049_s20  }
  0x24   : > { %s106_s9 = ssub.s32 %s1057_s22, %s1515_s25  ;;  %s720_s10 = sshll.u32 %s234_s7, 2 }
  0x25   : > { %p109_p10 = scmp.eq.s32.totalorder %s106_s9, 0  ;;  %s721_s11 = sshll.u32 %s1057_s22, 2 }
  0x26   : > { %s1499_s3 = sld [smem:[#allocation25_spill]]  ;;  %s238_s15 = scalar_lea.vmem [#allocation9], %s720_s10 }
  0x27   : > { %s1193_s27 = scalar_select %p109_p10, %s1049_s20, %s111_s24  }
  0x28   : > { %s247_s16 = sshll.u32 %s238_s15, 4  ;;  %p793_p2 = pnand %p806_p5, %p1184_p7  ;;  %s248_s16 = int_to_ptr.vmem [resolvable:$true] %s247_s16 }
  0x29   : > { %1498 = sst [smem:[#allocation21_spill]] %s1193_s27  ;;  %s235_s0 = scalar_lea.sflag [#allocation3], %s234_s7 }
  0x2a   : > { %256 = sbr.rel (%p1155_p8) target bundleno = 136 (0x88), region = 36 }
  0x2c   : > { %s243_s14 = scalar_lea.hbm %s1499_s3, %s721_s11 }
  0x2d   : > { %s245_s17 = sshll.u32 %s243_s14, 4  ;;  %s246_s17 = int_to_ptr.hbm [resolvable:$true] %s245_s17 }
  0x2e   : > { %795 = dma.hbm_to_vmem [thread:$0]  (!%p793_p2), %s246_s17, 64, %s248_s16, %s235_s0  }
  0x2f   : > { %1020 = dma.done.wait (%p1132_p1), [#allocation5], 32  }
  0x30   : > { %1022 = vsyncadd (%p1132_p1), [#allocation5], 4294967264 }
  0x31   : > { %1024 = dma.done.wait (%p1132_p1), [#allocation7], 64  }
  0x32   : > { %1026 = vsyncadd (%p1132_p1), [#allocation7], 4294967232  ;;  %s1213_s24 = sand.u32 1, %s1045_s19  }
  0x33   : > { %s1474_s0 = sshll.u32 %s1213_s24, 2  ;;  %s274_s8 = scalar_lea.sflag [#allocation3], %s1213_s24 }
  0x34   : > { %s277_s6 = scalar_lea.vmem [#allocation9], %s1474_s0 }
  0x35   : > { %1028 = dma.done.wait (%p1142_p4), %s274_s8, 64  }
  0x36   : > { %1030 = vsyncadd (%p1142_p4), %s274_s8, 4294967232 }
  0x37   : > { %283 = sfence }
  0x38   : > { %s1224_s26 = sshll.u32 %s1053_s21, 7  ;;  %v1241_v0 = vld [vmem:[%s277_s6] sm:$0xf]  ;;  %vm513_vm5 = vcmask 1040384   ;;  %vm515_vm6 = vcmask 1041408   ;;  %vm517_vm12 = vcmask 1042432  }
  0x39   : > { %s311_s7 = sld [smem:[#allocation2 + %s1224_s26]]  ;;  %s1228_s9 = sadd.s32 1, %s1224_s26  ;;  %vm338_vm0 = vcmp.eq.f32.partialorder %v1241_v0, 0.0  ;;  %vm411_vm1 = vcmp.eq.f32.partialorder %v1241_v0, 1.0 }
  0x3a   : > { %s313_s10 = sld [smem:[#allocation2 + %s1228_s9]]  ;;  %s1232_s28 = sadd.s32 2, %s1224_s26 }
  0x3b   : > { %s315_s11 = sld [smem:[#allocation2 + %s1232_s28]]  ;;  %s1236_s12 = sadd.s32 5, %s1224_s26 }
  0x3c   : > { %s1239_s13 = sld [smem:[#allocation2 + %s1236_s12]]  ;;  %s1244_s14 = sadd.s32 3, %s1224_s26 }
  0x3d   : > { %s339_s15 = sld [smem:[#allocation6 + %s1224_s26]]  ;;  %s1248_s16 = sadd.s32 4, %s1224_s26 }
  0x3e   : > { %s340_s17 = sld [smem:[#allocation6 + %s1228_s9]]  ;;  %s1476_s0 = sadd.s32 6, %s1224_s26 }
  0x3f   : > { %v329_v1 = vstv %s311_s7  ;;  %s341_s8 = sld [smem:[#allocation6 + %s1232_s28]]  ;;  %s1477_s1 = sadd.s32 7, %s1224_s26 }
  0x40   : > { %v332_v2 = vstv %s313_s10  ;;  %v330_v4 = vmul.f32 %v329_v1, %v1241_v0  ;;  %s342_s6 = sld [smem:[#allocation6 + %s1244_s14]]  ;;  %s1478_s2 = sadd.s32 8, %s1224_s26 }
  0x41   : > { %v333_v3 = vmul.f32 %v332_v2, %v1241_v0  ;;  %v335_v5 = vstv %s315_s11  ;;  %s343_s7 = sld [smem:[#allocation6 + %s1248_s16]]  ;;  %s426_s22 = sadd.s32 16, %s1224_s26 }
  0x42   : > { %s344_s10 = sld [smem:[#allocation6 + %s1236_s12]]  ;;  %v1266_v8 = vadd.f32 -0.8, %v330_v4  ;;  %v1269_v9 = vmul.f32 %v335_v5, %v1241_v0  ;;  %s428_s20 = sadd.s32 17, %s1224_s26 }
  0x43   : > { %v1260_v6 = vadd.f32 -3.2, %v333_v3  ;;  %s1264_s3 = sld [smem:[#allocation6 + %s1476_s0]]  ;;  %v351_v7 = vstv %s339_s15  ;;  %s412_s0 = sadd.s32 9, %s1224_s26 }
  0x44   : > { %s1273_s11 = sld [smem:[#allocation6 + %s1477_s1]]  ;;  %v353_v10 = vstv %s340_s17  ;;  %v352_v13 = vmul.f32 %v351_v7, %v1269_v9  ;;  %s414_s17 = sadd.s32 10, %s1224_s26 }
  0x45   : > { %s1277_s25 = sld [smem:[#allocation6 + %s1478_s2]]  ;;  %v354_v11 = vmul.f32 %v353_v10, %v1260_v6  ;;  %v359_v12 = vstv %s341_s8  ;;  %s416_s8 = sadd.s32 11, %s1224_s26 }
  0x46   : > { %s1281_s15 = sld [smem:[#allocation8 + %s1224_s26]]  ;;  %v360_v14 = vmul.f32 %v359_v12, %v1266_v8  ;;  %v367_v15 = vstv %s342_s6  ;;  %s418_s6 = sadd.s32 12, %s1224_s26 }
  0x47   : > { %s1287_s1 = sld [smem:[#allocation8 + %s1228_s9]]  ;;  %v356_v16 = vrot.slane %v354_v11, 7  ;;  %v369_v17 = vstv %s343_s7  ;;  %v368_v18 = vmul.f32 %v367_v15, %v1269_v9  ;;  %s420_s7 = sadd.s32 13, %s1224_s26 }
  0x48   : > { %s1291_s2 = sld [smem:[#allocation8 + %s1232_s28]]  ;;  %v370_v19 = vmul.f32 %v369_v17, %v1260_v6  ;;  %v375_v20 = vstv %s344_s10  ;;  %v362_v24 = vrot.slane %v360_v14, 6 }
  0x49   : > { %v376_v21 = vmul.f32 %v375_v20, %v1266_v8  ;;  %v383_v22 = vstv %s1264_s3  ;;  %s1298_s9 = sld [smem:[#allocation6 + %s412_s0]]  ;;  %v358_v23 = vadd.f32 %v356_v16, %v352_v13  ;;  %s422_s0 = sadd.s32 14, %s1224_s26 }
  0x4a   : > { %v372_v25 = vrot.slane %v370_v19, 7  ;;  %v385_v26 = vstv %s1273_s11  ;;  %s415_s28 = sld [smem:[#allocation6 + %s414_s17]]  ;;  %v384_v28 = vmul.f32 %v383_v22, %v1269_v9  ;;  %s424_s11 = sadd.s32 15, %s1224_s26  ;;  %v501_v19 = vstv %s1239_s13 }
  0x4b   : > { %v378_v27 = vrot.slane %v376_v21, 6  ;;  %v386_v29 = vmul.f32 %v385_v26, %v1260_v6  ;;  %v391_v30 = vstv %s1277_s25  ;;  %s417_s3 = sld [smem:[#allocation6 + %s416_s8]]  ;;  %v364_v34 = vadd.f32 %v362_v24, %v358_v23 }
  0x4c   : > { %v374_v31 = vadd.f32 %v372_v25, %v368_v18  ;;  %v392_v32 = vmul.f32 %v391_v30, %v1266_v8  ;;  %s1308_s10 = sld [smem:[#allocation6 + %s418_s6]]  ;;  %v365_v35 = vstv %s1281_s15  ;;  %s1502_s15 = sadd.s32 6, %s1224_s26 }
  0x4d   : > { %v388_v33 = vrot.slane %v386_v29, 7  ;;  %s1311_s17 = sld [smem:[#allocation6 + %s420_s7]]  ;;  %v381_v37 = vstv %s1287_s1  ;;  %v366_v45 = vadd.f32 %v365_v35, %v364_v34 }
  0x4e   : > { %v380_v36 = vadd.f32 %v378_v27, %v374_v31  ;;  %s423_s27 = sld [smem:[#allocation6 + %s422_s0]]  ;;  %v394_v39 = vrot.slane %v392_v32, 6  ;;  %v397_v56 = vstv %s1291_s2  ;;  %s309_s0 = scalar_lea.vmem [#allocation11], %s1213_s24 }
  0x4f   : > { %v390_v38 = vadd.f32 %v388_v33, %v384_v28  ;;  %s1317_s25 = sld [smem:[#allocation6 + %s424_s11]]  ;;  %v433_v40 = vstv %s1298_s9  ;;  %v400_v60 = vrot.slane %v366_v45, 3 }
  0x50   : > { %s1320_s8 = sld [smem:[#allocation6 + %s426_s22]]  ;;  %v435_v41 = vstv %s415_s28  ;;  %v434_v42 = vmul.f32 %v433_v40, %v1269_v9  ;;  %v382_v46 = vadd.f32 %v381_v37, %v380_v36 }
  0x51   : > { %s1322_s6 = sld [smem:[#allocation6 + %s428_s20]]  ;;  %v436_v43 = vmul.f32 %v435_v41, %v1260_v6  ;;  %v441_v44 = vstv %s417_s3  ;;  %v396_v49 = vadd.f32 %v394_v39, %v390_v38  ;;  %v402_v16 = vsel %vm338_vm0, %v400_v60, 0.0  ;;  %s568_s3 = scalar_lea.hbm %s1473_s5, %s1053_s21 }
  0x52   : > { %s1327_s1 = sld [smem:[#allocation8 + %s1244_s14]]  ;;  %v442_v47 = vmul.f32 %v441_v44, %v1266_v8  ;;  %v449_v48 = vstv %s1308_s10  ;;  %v404_v61 = vrot.slane %v382_v46, 3  ;;  %s1398_s10 = sshll.u32 %s309_s0, 4  ;;  %s571_s10 = int_to_ptr.vmem [resolvable:$true] %s1398_s10 }
  0x53   : > { %s1333_s20 = sld [smem:[#allocation8 + %s1248_s16]]  ;;  %v438_v50 = vrot.slane %v436_v43, 7  ;;  %v451_v51 = vstv %s1311_s17  ;;  %v450_v53 = vmul.f32 %v449_v48, %v1269_v9  ;;  %v398_v5 = vadd.f32 %v397_v56, %v396_v49 }
  0x54   : > { %s1337_s22 = sld [smem:[#allocation8 + %s1236_s12]]  ;;  %v444_v52 = vrot.slane %v442_v47, 6  ;;  %v452_v54 = vmul.f32 %v451_v51, %v1260_v6  ;;  %v457_v55 = vstv %s423_s27  ;;  %s1500_s12 = sadd.s32 7, %s1224_s26 }
  0x55   : > { %v440_v57 = vadd.f32 %v438_v50, %v434_v42  ;;  %v458_v58 = vmul.f32 %v457_v55, %v1266_v8  ;;  %v465_v59 = vstv %s1317_s25  ;;  %s1348_s27 = sld [smem:[#allocation2 + %s1248_s16]]  ;;  %v408_v20 = vrot.slane %v398_v5, 3  ;;  %s1404_s25 = sshll.u32 %s568_s3, 4  ;;  %s573_s25 = int_to_ptr.hbm [resolvable:$true] %s1404_s25 }
  0x56   : > { %v454_v62 = vrot.slane %v452_v54, 7  ;;  %v467_v63 = vstv %s1320_s8  ;;  %v466_v3 = vmul.f32 %v465_v59, %v1269_v9  ;;  %s1357_s2 = sld [smem:[#allocation2 + %s1244_s14]]  ;;  %s1501_s14 = sadd.s32 8, %s1224_s26 }
  0x57   : > { %v446_v1 = vadd.f32 %v444_v52, %v440_v57  ;;  %v460_v2 = vrot.slane %v458_v58, 6  ;;  %v468_v4 = vmul.f32 %v467_v63, %v1260_v6  ;;  %v473_v11 = vstv %s1322_s6  ;;  %s325_s13 = sld [smem:[#allocation2 + %s1500_s12]]  ;;  %s732_s26 = sshll.u32 %s1053_s21, 2 }
  0x58   : > { %v447_v7 = vstv %s1327_s1  ;;  %v456_v10 = vadd.f32 %v454_v62, %v450_v53  ;;  %v474_v15 = vmul.f32 %v473_v11, %v1266_v8  ;;  %v406_v8 = vsel %vm338_vm0, %v404_v61, 0.0  ;;  %s327_s16 = sld [smem:[#allocation2 + %s1501_s14]]  ;;  %s554_s21 = scalar_lea.hbm %s1472_s4, %s732_s26 }
  0x59   : > { %v448_v12 = vadd.f32 %v447_v7, %v446_v1  ;;  %v463_v13 = vstv %s1333_s20  ;;  %v470_v14 = vrot.slane %v468_v4, 7  ;;  %v410_v28 = vsel %vm338_vm0, %v408_v20, 0.0  ;;  %s323_s9 = sld [smem:[#allocation2 + %s1502_s15]]  ;;  %s1507_s8 = sshll.u32 %s1213_s24, 2 }
  0x5a   : > { %v462_v17 = vadd.f32 %v460_v2, %v456_v10  ;;  %v476_v9 = vrot.slane %v474_v15, 6  ;;  %v479_v22 = vstv %s1337_s22  ;;  %s1408_s6 = scalar_lea.vmem [#allocation10], %s1507_s8  ;;  %s558_s20 = sshll.u32 %s554_s21, 4  ;;  %s1417_s20 = int_to_ptr.hbm [resolvable:$true] %s558_s20 }
  0x5b   : > { %v472_v6 = vadd.f32 %v470_v14, %v466_v3  ;;  %v482_v18 = vrot.slane %v448_v12, 3  ;;  %v498_v30 = vstv %s1348_s27  ;;  %s556_s1 = sshll.u32 %s1408_s6, 4  ;;  %v1067_v12 = vmov 0   ;;  %s544_s22 = scalar_lea.sflag [#allocation12], %s1213_s24  ;;  %s1415_s1 = int_to_ptr.vmem [resolvable:$true] %s556_s1 }
  0x5c   : > { %v464_v21 = vadd.f32 %v463_v13, %v462_v17  ;;  %v494_v36 = vstv %s1357_s2  ;;  %s953_s27 = sshra.s32 %s573_s25, 4  ;;  %s959_s14 = scalar_lea.hbm %s1473_s5, 2  ;;  %s954_s27 = int_to_ptr.hbm [resolvable:$true] %s953_s27 }
  0x5d   : > { %v478_v23 = vadd.f32 %v476_v9, %v472_v6  ;;  %v484_v24 = vsel %vm411_vm1, %v482_v18, %v402_v16  ;;  %v523_v55 = vstv %s325_s13  ;;  %s955_s2 = scalar_lea.hbm %s954_s27, 1  ;;  %p960_p11 = scmp.lt.s32.totalorder %s954_s27, %s1473_s5 }
  0x5e   : > { %v486_v25 = vrot.slane %v464_v21, 3  ;;  %v502_v26 = vmul.f32 %v501_v19, %v484_v24  ;;  %v526_v58 = vstv %s327_s16  ;;  %p956_p1 = scmp.ne.s32.totalorder %s954_s27, %s955_s2  ;;  %p961_p12 = scmp.lt.s32.totalorder %s959_s14, %s955_s2 }
  0x5f   : > { %v480_v27 = vadd.f32 %v479_v22, %v478_v23  ;;  %v521_v60 = vstv %s323_s9 }
  0x60   : > { %v488_v29 = vsel %vm411_vm1, %v486_v25, %v406_v8  ;;  %v753_v31 = vcvt.f32.s32 %v502_v26  ;;  %v756_v41 = vand.u32 2147483648, %v502_v26  ;;  %v751_v44 = vand.u32 2147483647, %v502_v26  ;;  %p957_p4 = pnand %p956_p1, %p1177_p3  ;;  %p962_p13 = por %p961_p12, %p960_p11 }
  0x61   : > { %v490_v32 = vrot.slane %v480_v27, 3  ;;  %v730_v33 = vadd.f32 3.2, %v488_v29 }
  0x62   : > { %v754_v34 = vcvt.s32.f32 %v753_v31  ;;  %vm752_vm3 = vcmp.lt.f32.partialorder %v751_v44, 8388608.0  ;;  %p958_p8 = pneg %p957_p4 }
  0x63   : > { %v492_v35 = vsel %vm411_vm1, %v490_v32, %v410_v28  ;;  %v499_v37 = vmul.f32 %v730_v33, %v498_v30 }
  0x64   : > { %v729_v38 = vadd.f32 0.8, %v492_v35  ;;  %v755_v40 = vand.u32 2147483647, %v754_v34  ;;  %p963_p0 = pnand %p962_p13, %p958_p8 }
  0x65   : > { %v745_v39 = vcvt.f32.s32 %v499_v37  ;;  %v743_v43 = vand.u32 2147483647, %v499_v37  ;;  %v748_v46 = vand.u32 2147483648, %v499_v37 }
  0x66   : > { %v495_v42 = vmul.f32 %v729_v38, %v494_v36  ;;  %v757_v50 = vor.u32 %v756_v41, %v755_v40 }
  0x67   : > { %v746_v45 = vcvt.s32.f32 %v745_v39  ;;  %vm744_vm2 = vcmp.lt.f32.partialorder %v743_v43, 8388608.0 }
  0x68   : > { %v737_v47 = vcvt.f32.s32 %v495_v42  ;;  %v735_v48 = vand.u32 2147483647, %v495_v42  ;;  %v740_v52 = vand.u32 2147483648, %v495_v42  ;;  %v758_v57 = vsel %vm752_vm3, %v757_v50, %v502_v26 }
  0x69   : > { %v747_v49 = vand.u32 2147483647, %v746_v45  ;;  %v511_v1 = vrot.slane %v758_v57, 5  ;;  %vm527_vm8 = vcmp.gt.f32.partialorder %v758_v57, %v526_v58  ;;  %vm532_vm14 = vcmp.lt.f32.partialorder %v758_v57, 0.0 }
  0x6a   : > { %v738_v51 = vcvt.s32.f32 %v737_v47  ;;  %vm736_vm4 = vcmp.lt.f32.partialorder %v735_v48, 8388608.0 }
  0x6b   : > { %v749_v53 = vor.u32 %v748_v46, %v747_v49 }
  0x6c   : > { %v739_v54 = vand.u32 2147483647, %v738_v51 }
  0x6d   : > { %v750_v56 = vsel %vm744_vm2, %v749_v53, %v499_v37 }
  0x6e   : > { %v741_v59 = vor.u32 %v740_v52, %v739_v54  ;;  %vm1380_vm7 = vcmp.gt.f32.partialorder %v750_v56, %v523_v55  ;;  %v508_v63 = vrot.slane %v750_v56, 6  ;;  %vm530_vm11 = vcmp.lt.f32.partialorder %v750_v56, 0.0 }
  0x70   : > { %v742_v62 = vsel %vm736_vm4, %v741_v59, %v495_v42  ;;  %vm1066_vm4 = vmmov 1  }
  0x71   : > { %v505_v2 = vrot.slane %v742_v62, 7  ;;  %vm522_vm9 = vcmp.gt.f32.partialorder %v742_v62, %v521_v60  ;;  %vm529_vm10 = vcmp.lt.f32.partialorder %v742_v62, 0.0 }
  0x72   : > { %vm525_vm13 = vmor %vm522_vm9, %vm1380_vm7 }
  0x73   : > { %v514_v3 = vsel %vm513_vm5, %v1241_v0, %v505_v2  ;;  %vm1393_vm15 = vmor %vm525_vm13, %vm527_vm8 }
  0x74   : > { %v516_v5 = vsel %vm515_vm6, %v514_v3, %v508_v63  ;;  %vm531_vm0 = vmor %vm529_vm10, %vm530_vm11 }
  0x75   : > { %v518_v7 = vsel %vm517_vm12, %v516_v5, %v511_v1  ;;  %vm533_vm1 = vmor %vm531_vm0, %vm532_vm14 }
  0x76   : > { %vm759_vm2 = vcmp.lt.s32.totalorder %v518_v7, 0  ;;  %v760_v0 = vceil.f32 %v518_v7  ;;  %v761_v10 = vfloor.f32 %v518_v7  ;;  %vm534_vm3 = vmor %vm1393_vm15, %vm533_vm1 }
  0x77   : > { %vm535_vm5 = vmxor %vm534_vm3, %vm1066_vm4 }
  0x78   : > { %v762_v11 = vsel %vm759_vm2, %v760_v0, %v761_v10  ;;  %v536_v13 = vsel %vm535_vm5, 1, %v1067_v12 }
  0x79   : > { %v763_v14 = vcvt.f32.s32 %v762_v11  ;;  %537 = vst [vmem:[%s309_s0] sm:$0x1] %v536_v13 }
  0x7a   : > { %966 = shalt.err (!%p963_p0)
}
  0x7b   : > { %779 = dma.vmem_to_hbm [thread:$0]  (%p1177_p3), %s571_s10, 16, %s573_s25, %s544_s22   ;;  %520 = vst [vmem:[%s1408_s6] sm:$0xf] %v763_v14 }
  0x7c   : > { %s539_s9 = scalar_lea.sflag [#allocation4], %s1213_s24  ;;  %s981_s26 = sshra.s32 %s1417_s20, 4  ;;  %s982_s26 = int_to_ptr.hbm [resolvable:$true] %s981_s26 }
  0x7d   : > { %s983_s28 = scalar_lea.hbm %s982_s26, 4  ;;  %s987_s0 = scalar_lea.hbm %s1472_s4, 8 }
  0x7e   : > { %p984_p5 = scmp.ne.s32.totalorder %s982_s26, %s983_s28  ;;  %p988_p2 = scmp.lt.s32.totalorder %s982_s26, %s1472_s4 }
  0x7f   : > { %p989_p1 = scmp.lt.s32.totalorder %s987_s0, %s983_s28 }
  0x80   : > { %p985_p7 = pnand %p984_p5, %p1177_p3 }
  0x81   : > { %p990_p4 = por %p989_p1, %p988_p2 }
  0x82   : > { %p986_p10 = pneg %p985_p7 }
  0x84   : > { %p991_p8 = pnand %p990_p4, %p986_p10 }
  0x86   : > { %994 = shalt.err (!%p991_p8)
}
  0x87   : > { %778 = dma.vmem_to_hbm [thread:$0]  (%p1177_p3), %s1415_s1, 64, %s1417_s20, %s539_s9  }
  0x88 PF: > { %s584_s24 = sand.u32 1, %s1041_s18   ;;  %p797_p11 = pnand %p719_p9, %p1147_p6 }
  0x89   : > { %s585_s10 = scalar_lea.sflag [#allocation4], %s584_s24 }
  0x8a   : > { %p798_p12 = pneg %p797_p11 }
  0x8c   : > { %1032 = dma.done.wait (%p798_p12), %s585_s10, 64  }
  0x8d   : > { %1034 = vsyncadd (%p798_p12), %s585_s10, 4294967232  ;;  %s595_s21 = scalar_lea.sflag [#allocation12], %s584_s24 }
  0x8e   : > { %1036 = dma.done.wait (%p798_p12), %s595_s21, 16  }
  0x8f   : > { %1038 = vsyncadd (%p798_p12), %s595_s21, 4294967280  ;;  %s27_s23 = sadd.s32 1, %s1061_s23   ;;  %s1508_s30 = sld [smem:[#allocation18_spill]] }
  0x90   : > { %p24_p13 = scmp.ge.s32.totalorder %s27_s23, 4   ;;  %s1509_s20 = sld [smem:[#allocation21_spill]] }
  0x91   : > { %s1510_s21 = sld [smem:[#allocation19_spill]]  ;;  %s1512_s18 = smov %s1045_s19 }
  0x92   : > { %s1511_s22 = sld [smem:[#allocation20_spill]]  ;;  %26 = sbr.rel (!%p24_p13) target bundleno = 15 (0xf), region = 111 }
  0x95   : > { %s1513_s19 = smov %s1508_s30 }
  0x97   :  { %600 = vsyncpa [#allocation3], 1 }
  0x98   :  { %602 = vsyncpa [#allocation3 + $0x1], 1 }
  0x99   :  { %603 = vsyncpa [#allocation4], 1 }
  0x9a   :  { %605 = vsyncpa [#allocation4 + $0x1], 1 }
  0x9b   :  { %606 = vsyncpa [#allocation12], 1 }
  0x9c   :  { %608 = vsyncpa [#allocation12 + $0x1], 1 }
  0x9d   :  { %609 = vsyncpa [#allocation5], 1 }
  0x9e   :  { %611 = vsyncpa [#allocation5 + $0x1], 1 }
  0x9f   :  { %612 = vsyncpa [#allocation7], 1 }

</bundles_post_ra>
